<compile_context>
chip_gen: v6e
topology: v6e:2x2x1
jax: 0.10.0
libtpu: 0.0.40
codegen_flags: <defaults>
</compile_context>

<pallas_src>
import numpy as np
import jax
import jax.numpy as jnp
from jax.experimental import pallas as pl
from jax.experimental.pallas import tpu as pltpu  # noqa: F401  (TPU backend assumed)


# ----------------------------- Pallas kernel -------------------------------

def make_decoder_kernel(num_layers):
    """Fused decoder: FC+ReLU, then `num_layers` dense 'deconv' matmuls with
    ReLU+LayerNorm (all but last) or Sigmoid (last).  Everything stays in
    VMEM; only the final slab is stored."""

    def kernel(*refs):
        x_ref, fcw_ref, fcb_ref = refs[0], refs[1], refs[2]
        o_ref = refs[-1]

        # FC_hidden + ReLU  (ReLU commutes with the UnFlatten view).
        h = jnp.dot(x_ref[...], fcw_ref[...],
                    preferred_element_type=jnp.float32) + fcb_ref[...]
        h = jnp.maximum(h, 0.0)

        idx = 3
        for i in range(num_layers):
            m_ref, b_ref = refs[idx], refs[idx + 1]
            # ConvTranspose2d as one dense matmul on channel-major flattened
            # activations (batch folded into the M dimension).
            y = jnp.dot(h, m_ref[...],
                        preferred_element_type=jnp.float32) + b_ref[...]
            if i < num_layers - 1:
                g_ref, t_ref = refs[idx + 2], refs[idx + 3]
                idx += 4
                y = jnp.maximum(y, 0.0)                       # ReLU
                # LayerNorm over (C, H, W) per sample == per-row over features
                mu = jnp.mean(y, axis=-1, keepdims=True)
                var = jnp.mean(jnp.square(y - mu), axis=-1, keepdims=True)
                y = (y - mu) * jax.lax.rsqrt(var + 1e-5)
                h = y * g_ref[...] + t_ref[...]
            else:
                idx += 2
                o_ref[...] = jax.nn.sigmoid(y).astype(o_ref.dtype)   # Sigmoid

    return kernel


# --------------------- one-time parameter reformatting ----------------------

def _convt_as_dense(w, h_in, w_in):
    """ConvTranspose2d(k=3, s=1, p=0) weight (Cin, Cout, 3, 3) -> dense matrix
    (Cin*H*W, Cout*OH*OW) acting on channel-major flattened tensors.
    Scatter form: out[n, oc, p+du, q+dv] += x[n, ic, p, q] * w[ic, oc, du, dv]."""
    cin, cout, kh, kw = w.shape
    oh, ow = h_in + kh - 1, w_in + kw - 1
    eh = jnp.stack([jnp.eye(h_in, oh, k=d, dtype=w.dtype) for d in range(kh)])
    ew = jnp.stack([jnp.eye(w_in, ow, k=d, dtype=w.dtype) for d in range(kw)])
    m = jnp.einsum("codf,dpy,fqx->cpqoyx", w, eh, ew)   # (cin,H,W,cout,OH,OW)
    return m.reshape(cin * h_in * w_in, cout * oh * ow)


def prepare_params(params, cfg):
    """Hoisted out of the forward: flatten / transpose / densify all params."""
    image_channels, latent_dim, inner, max_c, num_layers, c_dec = cfg
    prep = {
        "fc_w": jnp.transpose(params["fc_w"]),          # (latent, flattened)
        "fc_b": params["fc_b"].reshape(1, -1),
        "layers": [],
    }
    size = inner
    for i, layer in enumerate(params["layers"]):
        w = layer["w"]
        cout = w.shape[1]
        oh = size + 2
        entry = {
            "m": _convt_as_dense(w, size, size),        # (cin*s*s, cout*oh*oh)
            "b": jnp.broadcast_to(layer["b"][:, None],
                                  (cout, oh * oh)).reshape(1, -1),
        }
        if i < num_layers - 1:
            entry["g"] = layer["gamma"].reshape(1, -1)  # (1, cout*oh*oh)
            entry["t"] = layer["beta"].reshape(1, -1)
        prep["layers"].append(entry)
        size = oh
    return prep


# ------------------------------- forward -----------------------------------

def decoder_forward(x, prep, cfg):
    image_channels, latent_dim, inner, max_c, num_layers, c_dec = cfg
    n = x.shape[0]
    layers = prep["layers"]
    out_feats = layers[-1]["m"].shape[1]
    final_size = inner + 2 * num_layers
    final_c = out_feats // (final_size * final_size)

    args = [x, prep["fc_w"], prep["fc_b"]]
    for i, layer in enumerate(layers):
        args.extend([layer["m"], layer["b"]])
        if i < num_layers - 1:
            args.extend([layer["g"], layer["t"]])

    out_flat = pl.pallas_call(
        make_decoder_kernel(num_layers),
        out_shape=jax.ShapeDtypeStruct((n, out_feats), jnp.float32),
    )(*args)
    # Channel-major flattening throughout -> plain reshape yields NCHW.
    return out_flat.reshape(n, final_c, final_size, final_size)


# -------------------------- deterministic params ----------------------------

def init_params(key, cfg):
    image_channels, latent_dim, inner, max_c, num_layers, c_dec = cfg
    flattened = max_c * inner * inner
    keys = iter(jax.random.split(key, 2 + 4 * num_layers))
    params = {
        "fc_w": 0.1 * jax.random.normal(next(keys), (flattened, latent_dim), jnp.float32),
        "fc_b": 0.1 * jax.random.normal(next(keys), (flattened,), jnp.float32),
        "layers": [],
    }
    channels, size = max_c, inner
    for i in range(num_layers):
        new_c = max(channels - c_dec, image_channels)
        layer = {
            "w": 0.1 * jax.random.normal(next(keys), (channels, new_c, 3, 3), jnp.float32),
            "b": 0.1 * jax.random.normal(next(keys), (new_c,), jnp.float32),
        }
        size += 2
        if i < num_layers - 1:
            layer["gamma"] = 1.0 + 0.1 * jax.random.normal(
                next(keys), (new_c, size, size), jnp.float32)
            layer["beta"] = 0.1 * jax.random.normal(
                next(keys), (new_c, size, size), jnp.float32)
        params["layers"].append(layer)
        channels = new_c
    return params


# ----------------------------- numpy reference ------------------------------

def _convt_ref(x, w, b):
    n, cin, h, wd = x.shape
    cout = w.shape[1]
    out = np.zeros((n, cout, h + 2, wd + 2), dtype=x.dtype)
    for nn in range(n):
        for ic in range(cin):
            for p in range(h):
                for q in range(wd):
                    out[nn, :, p:p + 3, q:q + 3] += x[nn, ic, p, q] * w[ic]
    out += b[None, :, None, None]
    return out


def reference_forward(x, params, cfg):
    image_channels, latent_dim, inner, max_c, num_layers, c_dec = cfg
    x = np.asarray(x, np.float64)
    fw = np.asarray(params["fc_w"], np.float64)
    fb = np.asarray(params["fc_b"], np.float64)
    h = np.maximum(x @ fw.T + fb, 0.0)
    z = h.reshape(x.shape[0], max_c, inner, inner)
    layers = params["layers"]
    for i, layer in enumerate(layers):
        z = _convt_ref(z, np.asarray(layer["w"], np.float64),
                       np.asarray(layer["b"], np.float64))
        if i < len(layers) - 1:
            z = np.maximum(z, 0.0)
            mean = z.mean(axis=(1, 2, 3), keepdims=True)
            var = z.var(axis=(1, 2, 3), keepdims=True)
            z = (z - mean) / np.sqrt(var + 1e-5)
            z = (z * np.asarray(layer["gamma"], np.float64)[None]
                 + np.asarray(layer["beta"], np.float64)[None])
        else:
            z = 1.0 / (1.0 + np.exp(-z))
    return z


# ---------------------------------- main ------------------------------------

if __name__ == "__main__":
    # Decoder(image_channels=3, latent_dim=8, flattened_dim=160,
    #         inner_image=4, max_channels=10, num_layers=3, c_decrease=3)
    cfg = (3, 8, 4, 10, 3, 3)
    batch = 2

    x = jax.random.normal(jax.random.PRNGKey(0), (batch, cfg[1]), jnp.float32)
    params = init_params(jax.random.PRNGKey(1), cfg)
    prep = prepare_params(params, cfg)      # one-time, hoisted out of forward

    fwd = jax.jit(lambda xx, pp: decoder_forward(xx, pp, cfg))
    out = jax.block_until_ready(fwd(x, prep))          # (2, 3, 10, 10) NCHW

    ref = reference_forward(x, params, cfg)
    assert out.shape == ref.shape, (out.shape, ref.shape)
    np.testing.assert_allclose(np.asarray(out), ref, rtol=2e-3, atol=2e-3)
    print("KERNEL_OK")
</pallas_src>

<mosaic_0001>
module attributes {stable_mosaic.version = 11 : i64} {
  func.func @kernel(%arg0: memref<2x8xf32, #tpu.memory_space<vmem>>, %arg1: memref<8x160xf32, #tpu.memory_space<vmem>>, %arg2: memref<1x160xf32, #tpu.memory_space<vmem>>, %arg3: memref<160x252xf32, #tpu.memory_space<vmem>>, %arg4: memref<1x252xf32, #tpu.memory_space<vmem>>, %arg5: memref<1x252xf32, #tpu.memory_space<vmem>>, %arg6: memref<1x252xf32, #tpu.memory_space<vmem>>, %arg7: memref<252x256xf32, #tpu.memory_space<vmem>>, %arg8: memref<1x256xf32, #tpu.memory_space<vmem>>, %arg9: memref<1x256xf32, #tpu.memory_space<vmem>>, %arg10: memref<1x256xf32, #tpu.memory_space<vmem>>, %arg11: memref<256x300xf32, #tpu.memory_space<vmem>>, %arg12: memref<1x300xf32, #tpu.memory_space<vmem>>, %arg13: memref<2x300xf32, #tpu.memory_space<vmem>>) attributes {dimension_semantics = [], scalar_prefetch = 0 : i64, scratch_operands = 0 : i64, tpu.core_type = #tpu.core_type<tc>} {
    %c0 = arith.constant 0 : index
    %c0_0 = arith.constant 0 : index
    %0 = vector.load %arg0[%c0, %c0_0] : memref<2x8xf32, #tpu.memory_space<vmem>>, vector<2x8xf32>
    %c0_1 = arith.constant 0 : index
    %c0_2 = arith.constant 0 : index
    %1 = vector.load %arg1[%c0_1, %c0_2] : memref<8x160xf32, #tpu.memory_space<vmem>>, vector<8x160xf32>
    %cst = arith.constant dense<0.000000e+00> : vector<2x160xf32>
    %2 = tpu.matmul %0, %1, %cst {dimension_numbers = #tpu.dot_dimension_numbers<[1], [0], [0], [1], [0, 0, 1, 1], [], []>} : vector<2x8xf32>, vector<8x160xf32>, vector<2x160xf32> -> vector<2x160xf32>
    %c0_3 = arith.constant 0 : index
    %c0_4 = arith.constant 0 : index
    %3 = vector.load %arg2[%c0_3, %c0_4] : memref<1x160xf32, #tpu.memory_space<vmem>>, vector<1x160xf32>
    %4 = vector.broadcast %3 : vector<1x160xf32> to vector<2x160xf32>
    %5 = arith.addf %2, %4 : vector<2x160xf32>
    %cst_5 = arith.constant 0.000000e+00 : f32
    %6 = vector.broadcast %cst_5 : f32 to vector<2x160xf32>
    %7 = arith.maximumf %5, %6 : vector<2x160xf32>
    %c0_6 = arith.constant 0 : index
    %c0_7 = arith.constant 0 : index
    %8 = vector.load %arg3[%c0_6, %c0_7] : memref<160x252xf32, #tpu.memory_space<vmem>>, vector<160x252xf32>
    %cst_8 = arith.constant dense<0.000000e+00> : vector<2x252xf32>
    %9 = tpu.matmul %7, %8, %cst_8 {dimension_numbers = #tpu.dot_dimension_numbers<[1], [0], [0], [1], [0, 0, 1, 1], [], []>} : vector<2x160xf32>, vector<160x252xf32>, vector<2x252xf32> -> vector<2x252xf32>
    %c0_9 = arith.constant 0 : index
    %c0_10 = arith.constant 0 : index
    %10 = vector.load %arg4[%c0_9, %c0_10] : memref<1x252xf32, #tpu.memory_space<vmem>>, vector<1x252xf32>
    %11 = vector.broadcast %10 : vector<1x252xf32> to vector<2x252xf32>
    %12 = arith.addf %9, %11 : vector<2x252xf32>
    %cst_11 = arith.constant 0.000000e+00 : f32
    %13 = vector.broadcast %cst_11 : f32 to vector<2x252xf32>
    %14 = arith.maximumf %12, %13 : vector<2x252xf32>
    %cst_12 = arith.constant dense<0.000000e+00> : vector<2xf32>
    %15 = vector.multi_reduction <add>, %14, %cst_12 [1] : vector<2x252xf32> to vector<2xf32>
    %16 = vector.shape_cast %15 : vector<2xf32> to vector<2x1xf32>
    %cst_13 = arith.constant 2.520000e+02 : f32
    %17 = vector.broadcast %cst_13 : f32 to vector<2x1xf32>
    %18 = arith.divf %16, %17 : vector<2x1xf32>
    %19 = vector.broadcast %18 : vector<2x1xf32> to vector<2x252xf32>
    %20 = arith.subf %14, %19 : vector<2x252xf32>
    %21 = arith.mulf %20, %20 : vector<2x252xf32>
    %cst_14 = arith.constant dense<0.000000e+00> : vector<2xf32>
    %22 = vector.multi_reduction <add>, %21, %cst_14 [1] : vector<2x252xf32> to vector<2xf32>
    %23 = vector.shape_cast %22 : vector<2xf32> to vector<2x1xf32>
    %cst_15 = arith.constant 2.520000e+02 : f32
    %24 = vector.broadcast %cst_15 : f32 to vector<2x1xf32>
    %25 = arith.divf %23, %24 : vector<2x1xf32>
    %26 = vector.broadcast %18 : vector<2x1xf32> to vector<2x252xf32>
    %27 = arith.subf %14, %26 : vector<2x252xf32>
    %cst_16 = arith.constant 9.99999974E-6 : f32
    %28 = vector.broadcast %cst_16 : f32 to vector<2x1xf32>
    %29 = arith.addf %25, %28 : vector<2x1xf32>
    %30 = math.rsqrt %29 : vector<2x1xf32>
    %31 = vector.broadcast %30 : vector<2x1xf32> to vector<2x252xf32>
    %32 = arith.mulf %27, %31 : vector<2x252xf32>
    %c0_17 = arith.constant 0 : index
    %c0_18 = arith.constant 0 : index
    %33 = vector.load %arg5[%c0_17, %c0_18] : memref<1x252xf32, #tpu.memory_space<vmem>>, vector<1x252xf32>
    %34 = vector.broadcast %33 : vector<1x252xf32> to vector<2x252xf32>
    %35 = arith.mulf %32, %34 : vector<2x252xf32>
    %c0_19 = arith.constant 0 : index
    %c0_20 = arith.constant 0 : index
    %36 = vector.load %arg6[%c0_19, %c0_20] : memref<1x252xf32, #tpu.memory_space<vmem>>, vector<1x252xf32>
    %37 = vector.broadcast %36 : vector<1x252xf32> to vector<2x252xf32>
    %38 = arith.addf %35, %37 : vector<2x252xf32>
    %c0_21 = arith.constant 0 : index
    %c0_22 = arith.constant 0 : index
    %39 = vector.load %arg7[%c0_21, %c0_22] : memref<252x256xf32, #tpu.memory_space<vmem>>, vector<252x256xf32>
    %cst_23 = arith.constant dense<0.000000e+00> : vector<2x256xf32>
    %40 = tpu.matmul %38, %39, %cst_23 {dimension_numbers = #tpu.dot_dimension_numbers<[1], [0], [0], [1], [0, 0, 1, 1], [], []>} : vector<2x252xf32>, vector<252x256xf32>, vector<2x256xf32> -> vector<2x256xf32>
    %c0_24 = arith.constant 0 : index
    %c0_25 = arith.constant 0 : index
    %41 = vector.load %arg8[%c0_24, %c0_25] : memref<1x256xf32, #tpu.memory_space<vmem>>, vector<1x256xf32>
    %42 = vector.broadcast %41 : vector<1x256xf32> to vector<2x256xf32>
    %43 = arith.addf %40, %42 : vector<2x256xf32>
    %cst_26 = arith.constant 0.000000e+00 : f32
    %44 = vector.broadcast %cst_26 : f32 to vector<2x256xf32>
    %45 = arith.maximumf %43, %44 : vector<2x256xf32>
    %cst_27 = arith.constant dense<0.000000e+00> : vector<2xf32>
    %46 = vector.multi_reduction <add>, %45, %cst_27 [1] : vector<2x256xf32> to vector<2xf32>
    %47 = vector.shape_cast %46 : vector<2xf32> to vector<2x1xf32>
    %cst_28 = arith.constant 2.560000e+02 : f32
    %48 = vector.broadcast %cst_28 : f32 to vector<2x1xf32>
    %49 = arith.divf %47, %48 : vector<2x1xf32>
    %50 = vector.broadcast %49 : vector<2x1xf32> to vector<2x256xf32>
    %51 = arith.subf %45, %50 : vector<2x256xf32>
    %52 = arith.mulf %51, %51 : vector<2x256xf32>
    %cst_29 = arith.constant dense<0.000000e+00> : vector<2xf32>
    %53 = vector.multi_reduction <add>, %52, %cst_29 [1] : vector<2x256xf32> to vector<2xf32>
    %54 = vector.shape_cast %53 : vector<2xf32> to vector<2x1xf32>
    %cst_30 = arith.constant 2.560000e+02 : f32
    %55 = vector.broadcast %cst_30 : f32 to vector<2x1xf32>
    %56 = arith.divf %54, %55 : vector<2x1xf32>
    %57 = vector.broadcast %49 : vector<2x1xf32> to vector<2x256xf32>
    %58 = arith.subf %45, %57 : vector<2x256xf32>
    %cst_31 = arith.constant 9.99999974E-6 : f32
    %59 = vector.broadcast %cst_31 : f32 to vector<2x1xf32>
    %60 = arith.addf %56, %59 : vector<2x1xf32>
    %61 = math.rsqrt %60 : vector<2x1xf32>
    %62 = vector.broadcast %61 : vector<2x1xf32> to vector<2x256xf32>
    %63 = arith.mulf %58, %62 : vector<2x256xf32>
    %c0_32 = arith.constant 0 : index
    %c0_33 = arith.constant 0 : index
    %64 = vector.load %arg9[%c0_32, %c0_33] : memref<1x256xf32, #tpu.memory_space<vmem>>, vector<1x256xf32>
    %65 = vector.broadcast %64 : vector<1x256xf32> to vector<2x256xf32>
    %66 = arith.mulf %63, %65 : vector<2x256xf32>
    %c0_34 = arith.constant 0 : index
    %c0_35 = arith.constant 0 : index
    %67 = vector.load %arg10[%c0_34, %c0_35] : memref<1x256xf32, #tpu.memory_space<vmem>>, vector<1x256xf32>
    %68 = vector.broadcast %67 : vector<1x256xf32> to vector<2x256xf32>
    %69 = arith.addf %66, %68 : vector<2x256xf32>
    %c0_36 = arith.constant 0 : index
    %c0_37 = arith.constant 0 : index
    %70 = vector.load %arg11[%c0_36, %c0_37] : memref<256x300xf32, #tpu.memory_space<vmem>>, vector<256x300xf32>
    %cst_38 = arith.constant dense<0.000000e+00> : vector<2x300xf32>
    %71 = tpu.matmul %69, %70, %cst_38 {dimension_numbers = #tpu.dot_dimension_numbers<[1], [0], [0], [1], [0, 0, 1, 1], [], []>} : vector<2x256xf32>, vector<256x300xf32>, vector<2x300xf32> -> vector<2x300xf32>
    %c0_39 = arith.constant 0 : index
    %c0_40 = arith.constant 0 : index
    %72 = vector.load %arg12[%c0_39, %c0_40] : memref<1x300xf32, #tpu.memory_space<vmem>>, vector<1x300xf32>
    %73 = vector.broadcast %72 : vector<1x300xf32> to vector<2x300xf32>
    %74 = arith.addf %71, %73 : vector<2x300xf32>
    %75 = arith.negf %74 : vector<2x300xf32>
    %76 = math.exp %75 : vector<2x300xf32>
    %cst_41 = arith.constant 1.000000e+00 : f32
    %77 = vector.broadcast %cst_41 : f32 to vector<2x300xf32>
    %78 = arith.addf %77, %76 : vector<2x300xf32>
    %79 = arith.divf %77, %78 : vector<2x300xf32>
    %c0_42 = arith.constant 0 : index
    %c0_43 = arith.constant 0 : index
    %80 = vector.load %arg13[%c0_42, %c0_43] : memref<2x300xf32, #tpu.memory_space<vmem>>, vector<2x300xf32>
    tpu.vector_store %arg13[%c0_42, %c0_43], %79 {strides = array<i32>} : memref<2x300xf32, #tpu.memory_space<vmem>>, vector<2x300xf32>,
    return
  }
}

</mosaic_0001>

<bundles_post_ra>
// kernel: _lambda_.1
= control target key start
LH: loop header
LB: loop body
LE: loop exit
PB: predicated region body
PF: predicated region fallthrough
CT: control target
= control target key end

     0   :  { %v887_v2 = vmov 0.0   ;;  %vm59_vm0 = vcmask 64512   ;;  %v49_v44 = vlaneseq  ;;  %vm188_vm1 = vcmask 261120   ;;  %s1678_s1 = inlined_call_operand.vmem [shape: f32[8,160], index: 1, kind: input, shape index: {}]   ;;  %s1679_s0 = inlined_call_operand.vmem [shape: f32[2,8], index: 0, kind: input, shape index: {}]   ;;  %s1680_s3 = inlined_call_operand.vmem [shape: f32[160,252], index: 3, kind: input, shape index: {}]   ;;  %s1681_s2 = inlined_call_operand.vmem [shape: f32[1,160], index: 2, kind: input, shape index: {}]   ;;  %s1682_s4 = inlined_call_operand.vmem [shape: f32[1,252], index: 4, kind: input, shape index: {}]   ;;  %s1683_s7 = inlined_call_operand.vmem [shape: f32[252,256], index: 7, kind: input, shape index: {}]   ;;  %s1684_s5 = inlined_call_operand.vmem [shape: f32[1,252], index: 5, kind: input, shape index: {}]   ;;  %s1685_s6 = inlined_call_operand.vmem [shape: f32[1,252], index: 6, kind: input, shape index: {}]   ;;  %s1686_s8 = inlined_call_operand.vmem [shape: f32[1,256], index: 8, kind: input, shape index: {}]   ;;  %s1687_s11 = inlined_call_operand.vmem [shape: f32[256,300], index: 11, kind: input, shape index: {}]   ;;  %s1688_s9 = inlined_call_operand.vmem [shape: f32[1,256], index: 9, kind: input, shape index: {}]   ;;  %s1689_s10 = inlined_call_operand.vmem [shape: f32[1,256], index: 10, kind: input, shape index: {}]   ;;  %s1690_s12 = inlined_call_operand.vmem [shape: f32[1,300], index: 12, kind: input, shape index: {}]   ;;  %s1691_s13 = inlined_call_operand.vmem [shape: f32[2,300], index: 13, kind: output, shape index: {}]  }
   0x1   :  { %v46_v0 = vld [vmem:[%s1678_s1 + $0x8] sm:$0xff]  ;;  %v45_v1 = vld [vmem:[%s1678_s1] sm:$0xff]  ;;  %127 = vmatprep.mubr.f32.mxu0 %v887_v2  ;;  %v167_v4 = vld [vmem:[%s1680_s3 + $0xf8] sm:$0xff]  ;;  %vm265_vm2 = vcmask 1041408   ;;  %vm267_vm3 = vcmask 1008640   ;;  %vm396_vm4 = vcmask 1043456  }
   0x2   :  { %v44_v3 = vld [vmem:[%s1679_s0] sm:$0x3]  ;;  %93 = vmatprep.subr.mxu0 %v46_v0  ;;  %v166_v5 = vld [vmem:[%s1680_s3 + $0xf0] sm:$0xff]  ;;  %v165_v6 = vld [vmem:[%s1680_s3 + $0xe8] sm:$0xff]  ;;  %192 = vmatprep.subr.mxu1 %v167_v4  ;;  %v1088_v45 = vshrl.u32 %v49_v44, 7  ;;  %vm392_vm5 = vcmask 1014784  }
   0x3   :  { %94 = vmatpush1.msra.mxu0 %v45_v1  ;;  %v164_v7 = vld [vmem:[%s1680_s3 + $0xe0] sm:$0xff]  ;;  %193 = vmatpush1.msra.mxu1 %v166_v5  ;;  %v163_v8 = vld [vmem:[%s1680_s3 + $0xd8] sm:$0xff]  ;;  %v162_v9 = vld [vmem:[%s1680_s3 + $0xd0] sm:$0xff]  ;;  %vm817_vm6 = vcmask 1043458   ;;  %vm819_vm8 = vcmask 357380  }
   0x4   :  { %826 = vmatmul.mubr.msk.f32.vlgmr.msra.gmra.mxu0 %vm59_vm0, %v44_v3  ;;  %194 = vmatprep.subr.mxu1 %v165_v6  ;;  %v161_v10 = vld [vmem:[%s1680_s3 + $0xc8] sm:$0xff]  ;;  %v160_v11 = vld [vmem:[%s1680_s3 + $0xc0] sm:$0xff]  ;;  %v159_v12 = vld [vmem:[%s1680_s3 + $0xb8] sm:$0xff]  ;;  %v1091_v46 = vsub.s32 0, %v1088_v45  ;;  %v1097_v48 = vsub.s32 1, %v1088_v45 }
   0x5   :  { %195 = vmatpush1.msra.mxu1 %v164_v7  ;;  %v158_v13 = vld [vmem:[%s1680_s3 + $0xb0] sm:$0xff]  ;;  %v157_v14 = vld [vmem:[%s1680_s3 + $0xa8] sm:$0xff]  ;;  %v156_v15 = vld [vmem:[%s1680_s3 + $0xa0] sm:$0xff] }
   0x6   :  { %196 = vmatprep.subr.mxu1 %v163_v8  ;;  %v155_v16 = vld [vmem:[%s1680_s3 + $0x98] sm:$0xff]  ;;  %v154_v17 = vld [vmem:[%s1680_s3 + $0x90] sm:$0xff]  ;;  %v153_v18 = vld [vmem:[%s1680_s3 + $0x88] sm:$0xff] }
   0x7   :  { %197 = vmatpush1.msra.mxu1 %v162_v9  ;;  %v152_v19 = vld [vmem:[%s1680_s3 + $0x80] sm:$0xff]  ;;  %v151_v20 = vld [vmem:[%s1680_s3 + $0x78] sm:$0xff]  ;;  %v150_v21 = vld [vmem:[%s1680_s3 + $0x70] sm:$0xff] }
   0x8   :  { %198 = vmatprep.subr.mxu1 %v161_v10  ;;  %v149_v22 = vld [vmem:[%s1680_s3 + $0x68] sm:$0xff]  ;;  %v148_v23 = vld [vmem:[%s1680_s3 + $0x60] sm:$0xff]  ;;  %v147_v24 = vld [vmem:[%s1680_s3 + $0x58] sm:$0xff] }
   0x9   :  { %199 = vmatpush1.msra.mxu1 %v160_v11  ;;  %v146_v25 = vld [vmem:[%s1680_s3 + $0x50] sm:$0xff]  ;;  %v145_v26 = vld [vmem:[%s1680_s3 + $0x48] sm:$0xff]  ;;  %v144_v27 = vld [vmem:[%s1680_s3 + $0x40] sm:$0xff] }
   0xa   :  { %200 = vmatprep.subr.mxu1 %v159_v12  ;;  %v143_v28 = vld [vmem:[%s1680_s3 + $0x38] sm:$0xff]  ;;  %v142_v29 = vld [vmem:[%s1680_s3 + $0x30] sm:$0xff]  ;;  %v141_v30 = vld [vmem:[%s1680_s3 + $0x28] sm:$0xff] }
   0xb   :  { %201 = vmatpush1.msra.mxu1 %v158_v13  ;;  %v140_v31 = vld [vmem:[%s1680_s3 + $0x20] sm:$0xff]  ;;  %v139_v32 = vld [vmem:[%s1680_s3 + $0x18] sm:$0xff]  ;;  %v138_v33 = vld [vmem:[%s1680_s3 + $0x10] sm:$0xff] }
   0xc   :  { %202 = vmatprep.subr.mxu1 %v157_v14  ;;  %v137_v34 = vld [vmem:[%s1680_s3 + $0x8] sm:$0xff]  ;;  %v136_v35 = vld [vmem:[%s1680_s3] sm:$0xff]  ;;  %v175_v36 = vld [vmem:[%s1680_s3 + $0x138] sm:$0xff] }
   0xd   :  { %203 = vmatpush1.msra.mxu1 %v156_v15  ;;  %v174_v37 = vld [vmem:[%s1680_s3 + $0x130] sm:$0xff]  ;;  %v173_v38 = vld [vmem:[%s1680_s3 + $0x128] sm:$0xff]  ;;  %v172_v39 = vld [vmem:[%s1680_s3 + $0x120] sm:$0xff] }
   0xe   :  { %204 = vmatprep.subr.mxu1 %v155_v16  ;;  %v171_v40 = vld [vmem:[%s1680_s3 + $0x118] sm:$0xff]  ;;  %v170_v41 = vld [vmem:[%s1680_s3 + $0x110] sm:$0xff]  ;;  %v169_v42 = vld [vmem:[%s1680_s3 + $0x108] sm:$0xff] }
   0xf   :  { %205 = vmatpush1.msra.mxu1 %v154_v17  ;;  %v168_v43 = vld [vmem:[%s1680_s3 + $0x100] sm:$0xff]  ;;  %v347_v5 = vld [vmem:[%s1683_s7 + $0xf8] sm:$0xff]  ;;  %v346_v6 = vld [vmem:[%s1683_s7 + $0xf0] sm:$0xff] }
  0x10   :  { %206 = vmatprep.subr.mxu1 %v153_v18  ;;  %v47_v47 = vld [vmem:[%s1681_s2] sm:$0x3]  ;;  %v345_v7 = vld [vmem:[%s1683_s7 + $0xe8] sm:$0xff]  ;;  %403 = vmatprep.subr.mxu0 %v347_v5  ;;  %v343_v9 = vld [vmem:[%s1683_s7 + $0xd8] sm:$0xff] }
  0x11   :  { %207 = vmatpush1.msra.mxu1 %v152_v19  ;;  %v52_v49 = vrot.slane %v47_v47, %v1091_v46  ;;  %v56_v50 = vrot.slane %v47_v47, %v1097_v48  ;;  %v176_v57 = vld [vmem:[%s1682_s4] sm:$0x3]  ;;  %404 = vmatpush1.msra.mxu0 %v346_v6  ;;  %v342_v10 = vld [vmem:[%s1683_s7 + $0xd0] sm:$0xff]  ;;  %v341_v11 = vld [vmem:[%s1683_s7 + $0xc8] sm:$0xff] }
  0x12   :  { %208 = vmatprep.subr.mxu1 %v151_v20  ;;  %v181_v58 = vrot.slane %v176_v57, %v1091_v46  ;;  %v185_v59 = vrot.slane %v176_v57, %v1097_v48  ;;  %v344_v8 = vld [vmem:[%s1683_s7 + $0xe0] sm:$0xff]  ;;  %405 = vmatprep.subr.mxu0 %v345_v7  ;;  %v339_v13 = vld [vmem:[%s1683_s7 + $0xb8] sm:$0xff]  ;;  %v338_v14 = vld [vmem:[%s1683_s7 + $0xb0] sm:$0xff] }
  0x13   :  { %209 = vmatpush1.msra.mxu1 %v150_v21  ;;  %406 = vmatpush1.msra.mxu0 %v344_v8  ;;  %v340_v12 = vld [vmem:[%s1683_s7 + $0xc0] sm:$0xff]  ;;  %v337_v15 = vld [vmem:[%s1683_s7 + $0xa8] sm:$0xff]  ;;  %v335_v17 = vld [vmem:[%s1683_s7 + $0x98] sm:$0xff] }
  0x14   :  { %210 = vmatprep.subr.mxu1 %v149_v22  ;;  %407 = vmatprep.subr.mxu0 %v343_v9  ;;  %v336_v16 = vld [vmem:[%s1683_s7 + $0xa0] sm:$0xff]  ;;  %v334_v18 = vld [vmem:[%s1683_s7 + $0x90] sm:$0xff]  ;;  %v333_v19 = vld [vmem:[%s1683_s7 + $0x88] sm:$0xff] }
  0x15   :  { %211 = vmatpush1.msra.mxu1 %v148_v23  ;;  %408 = vmatpush1.msra.mxu0 %v342_v10  ;;  %v332_v20 = vld [vmem:[%s1683_s7 + $0x80] sm:$0xff]  ;;  %v331_v21 = vld [vmem:[%s1683_s7 + $0x78] sm:$0xff]  ;;  %v330_v22 = vld [vmem:[%s1683_s7 + $0x70] sm:$0xff] }
  0x16   :  { %212 = vmatprep.subr.mxu1 %v147_v24  ;;  %409 = vmatprep.subr.mxu0 %v341_v11  ;;  %v329_v23 = vld [vmem:[%s1683_s7 + $0x68] sm:$0xff]  ;;  %v328_v24 = vld [vmem:[%s1683_s7 + $0x60] sm:$0xff]  ;;  %v371_v57 = vld [vmem:[%s1683_s7 + $0x1b8] sm:$0xff] }
  0x17   :  { %213 = vmatpush1.msra.mxu1 %v146_v25  ;;  %410 = vmatpush1.msra.mxu0 %v340_v12  ;;  %v327_v25 = vld [vmem:[%s1683_s7 + $0x58] sm:$0xff]  ;;  %v358_v6 = vld [vmem:[%s1683_s7 + $0x150] sm:$0xff]  ;;  %v357_v7 = vld [vmem:[%s1683_s7 + $0x148] sm:$0xff] }
  0x18   :  { %214 = vmatprep.subr.mxu1 %v145_v26  ;;  %411 = vmatprep.subr.mxu0 %v339_v13  ;;  %v326_v26 = vld [vmem:[%s1683_s7 + $0x50] sm:$0xff]  ;;  %v359_v5 = vld [vmem:[%s1683_s7 + $0x158] sm:$0xff]  ;;  %v356_v8 = vld [vmem:[%s1683_s7 + $0x140] sm:$0xff] }
  0x19   :  { %215 = vmatpush1.msra.mxu1 %v144_v27  ;;  %412 = vmatpush1.msra.mxu0 %v338_v14  ;;  %v325_v27 = vld [vmem:[%s1683_s7 + $0x48] sm:$0xff]  ;;  %v355_v9 = vld [vmem:[%s1683_s7 + $0x138] sm:$0xff]  ;;  %v354_v10 = vld [vmem:[%s1683_s7 + $0x130] sm:$0xff] }
  0x1a   :  { %216 = vmatprep.subr.mxu1 %v143_v28  ;;  %413 = vmatprep.subr.mxu0 %v337_v15  ;;  %v324_v28 = vld [vmem:[%s1683_s7 + $0x40] sm:$0xff]  ;;  %v353_v11 = vld [vmem:[%s1683_s7 + $0x128] sm:$0xff]  ;;  %v351_v13 = vld [vmem:[%s1683_s7 + $0x118] sm:$0xff] }
  0x1b   :  { %217 = vmatpush1.msra.mxu1 %v142_v29  ;;  %414 = vmatpush1.msra.mxu0 %v336_v16  ;;  %v323_v29 = vld [vmem:[%s1683_s7 + $0x38] sm:$0xff]  ;;  %v352_v12 = vld [vmem:[%s1683_s7 + $0x120] sm:$0xff]  ;;  %v350_v14 = vld [vmem:[%s1683_s7 + $0x110] sm:$0xff] }
  0x1c   :  { %218 = vmatprep.subr.mxu1 %v141_v30  ;;  %415 = vmatprep.subr.mxu0 %v335_v17  ;;  %v322_v30 = vld [vmem:[%s1683_s7 + $0x30] sm:$0xff]  ;;  %v349_v15 = vld [vmem:[%s1683_s7 + $0x108] sm:$0xff]  ;;  %v348_v16 = vld [vmem:[%s1683_s7 + $0x100] sm:$0xff] }
  0x1d   :  { %219 = vmatpush1.msra.mxu1 %v140_v31  ;;  %416 = vmatpush1.msra.mxu0 %v334_v18  ;;  %v321_v31 = vld [vmem:[%s1683_s7 + $0x28] sm:$0xff]  ;;  %vm818_vm7 = vmor %vm817_vm6, %vm265_vm2 }
  0x1e   :  { %220 = vmatprep.subr.mxu1 %v139_v32  ;;  %417 = vmatprep.subr.mxu0 %v333_v19  ;;  %v320_v32 = vld [vmem:[%s1683_s7 + $0x20] sm:$0xff]  ;;  %vm820_vm9 = vmor %vm819_vm8, %vm818_vm7 }
  0x1f   :  { %221 = vmatpush1.msra.mxu1 %v138_v33  ;;  %418 = vmatpush1.msra.mxu0 %v332_v20  ;;  %v319_v33 = vld [vmem:[%s1683_s7 + $0x18] sm:$0xff]  ;;  %v288_v20 = vld [vmem:[%s1684_s5] sm:$0x3] }
  0x20   :  { %222 = vmatprep.subr.mxu1 %v137_v34  ;;  %419 = vmatprep.subr.mxu0 %v331_v21  ;;  %v318_v34 = vld [vmem:[%s1683_s7 + $0x10] sm:$0xff]  ;;  %v302_v21 = vld [vmem:[%s1685_s6] sm:$0x3] }
  0x21   :  { %223 = vmatpush1.msra.mxu1 %v136_v35  ;;  %420 = vmatpush1.msra.mxu0 %v330_v22  ;;  %v317_v35 = vld [vmem:[%s1683_s7 + $0x8] sm:$0xff]  ;;  %v297_v22 = vrot.slane %v288_v20, %v1097_v48 }
  0x22   :  { %248 = vmatprep.subr.mxu1 %v175_v36  ;;  %421 = vmatprep.subr.mxu0 %v329_v23  ;;  %v316_v36 = vld [vmem:[%s1683_s7] sm:$0xff]  ;;  %v293_v23 = vrot.slane %v288_v20, %v1091_v46  ;;  %v528_v20 = vld [vmem:[%s1687_s11 + $0x18] sm:$0xff] }
  0x23   :  { %249 = vmatpush2.msra.mxu1 %v174_v37  ;;  %422 = vmatpush1.msra.mxu0 %v328_v24  ;;  %v379_v37 = vld [vmem:[%s1683_s7 + $0x1f8] sm:$0xf] }
  0x24   :  { %250 = vmatprep.subr.mxu1 %v173_v38  ;;  %423 = vmatprep.subr.mxu0 %v327_v25  ;;  %v378_v38 = vld [vmem:[%s1683_s7 + $0x1f0] sm:$0xf] }
  0x25   :  { %251 = vmatpush2.msra.mxu1 %v172_v39  ;;  %424 = vmatpush1.msra.mxu0 %v326_v26  ;;  %v377_v39 = vld [vmem:[%s1683_s7 + $0x1e8] sm:$0xff]  ;;  %v311_v26 = vrot.slane %v302_v21, %v1097_v48 }
  0x26   :  { %252 = vmatprep.subr.mxu1 %v171_v40  ;;  %425 = vmatprep.subr.mxu0 %v325_v27  ;;  %v376_v40 = vld [vmem:[%s1683_s7 + $0x1e0] sm:$0xff] }
  0x27   :  { %253 = vmatpush2.msra.mxu1 %v170_v41  ;;  %426 = vmatpush1.msra.mxu0 %v324_v28  ;;  %v375_v41 = vld [vmem:[%s1683_s7 + $0x1d8] sm:$0xff]  ;;  %v307_v28 = vrot.slane %v302_v21, %v1091_v46  ;;  %v526_v21 = vld [vmem:[%s1687_s11 + $0x8] sm:$0xff] }
  0x28   :  { %254 = vmatprep.subr.mxu1 %v169_v42  ;;  %427 = vmatprep.subr.mxu0 %v323_v29  ;;  %v374_v42 = vld [vmem:[%s1683_s7 + $0x1d0] sm:$0xff] }
  0x29   :  { %255 = vmatpush2.msra.mxu1 %v168_v43  ;;  %428 = vmatpush1.msra.mxu0 %v322_v30  ;;  %v373_v43 = vld [vmem:[%s1683_s7 + $0x1c8] sm:$0xff] }
  0x2a   :  { %429 = vmatprep.subr.mxu0 %v321_v31 }
  0x2b   :  { %430 = vmatpush1.msra.mxu0 %v320_v32 }
  0x2c   :  { %431 = vmatprep.subr.mxu0 %v319_v33  ;;  %v380_v33 = vld [vmem:[%s1686_s8] sm:$0x3] }
  0x2d   :  { %432 = vmatpush1.msra.mxu0 %v318_v34  ;;  %v385_v34 = vrot.slane %v380_v33, %v1091_v46 }
  0x2e   :  { %433 = vmatprep.subr.mxu0 %v317_v35  ;;  %v389_v35 = vrot.slane %v380_v33, %v1097_v48 }
  0x2f   :  { %434 = vmatpush1.msra.mxu0 %v316_v36 }
  0x30   :  { %828 = vmatprep.subr.msk.mxu0 %vm396_vm4, %v379_v37 }
  0x31   :  { %829 = vmatpush2.msk.msra.mxu0 %vm396_vm4, %v378_v38 }
  0x32   :  { %437 = vmatprep.subr.mxu0 %v377_v39 }
  0x33   :  { %438 = vmatpush2.msra.mxu0 %v376_v40 }
  0x34   :  { %439 = vmatprep.subr.mxu0 %v375_v41 }
  0x35   :  { %440 = vmatpush2.msra.mxu0 %v374_v42 }
  0x36   :  { %441 = vmatprep.subr.mxu0 %v373_v43 }
  0xc4   :  { %v129_v51 = vpop.f32.mrf.mxu0 }
  0xc5   :  { %v130_v52 = vadd.f32 %v129_v51, %v52_v49 }
  0xc6   :  { %v131_v53 = vpop.f32.mrf.mxu0 }
  0xc7   :  { %v132_v54 = vadd.f32 %v131_v53, %v56_v50  ;;  %v134_v56 = vmax.f32 %v130_v52, 0.0 }
  0xc9   :  { %v135_v55 = vmax.f32 %v132_v54, 0.0 }
  0xcb   :  { %827 = vmatprep.mubr.msk.f32.mxu1 %vm188_vm1, %v135_v55 }
  0xcc   :  { %257 = vmatmul.mubr.f32.vlgmr.msra.gmra.mxu1 %v134_v56  ;;  %v372_v56 = vld [vmem:[%s1683_s7 + $0x1c0] sm:$0xff] }
  0xcd   :  { %442 = vmatpush2.msra.mxu0 %v372_v56  ;;  %v559_v56 = vld [vmem:[%s1687_s11 + $0x110] sm:$0xff] }
  0xce   :  { %443 = vmatprep.subr.mxu0 %v371_v57  ;;  %v558_v57 = vld [vmem:[%s1687_s11 + $0x108] sm:$0xff] }
 0x18c   :  { %v258_v60 = vpop.f32.mrf.mxu1 }
 0x18d   :  { %v1106_v61 = vadd.f32 %v258_v60, %v181_v58  ;;  %v370_v58 = vld [vmem:[%s1683_s7 + $0x1b0] sm:$0xff]  ;;  %v368_v60 = vld [vmem:[%s1683_s7 + $0x1a0] sm:$0xff] }
 0x18e   :  { %v260_v62 = vpop.f32.mrf.mxu1  ;;  %444 = vmatpush2.msra.mxu0 %v370_v58  ;;  %v556_v58 = vld [vmem:[%s1687_s11 + $0xf8] sm:$0xff] }
 0x18f   :  { %v263_v63 = vmax.f32 %v1106_v61, 0.0  ;;  %v1109_v0 = vadd.f32 %v260_v62, %v185_v59  ;;  %v369_v59 = vld [vmem:[%s1683_s7 + $0x1a8] sm:$0xff]  ;;  %v367_v61 = vld [vmem:[%s1683_s7 + $0x198] sm:$0xff]  ;;  %v366_v62 = vld [vmem:[%s1683_s7 + $0x190] sm:$0xff] }
 0x190   :  { %445 = vmatprep.subr.mxu0 %v369_v59  ;;  %v555_v59 = vld [vmem:[%s1687_s11 + $0xf0] sm:$0xff] }
 0x191   :  { %v264_v1 = vmax.f32 %v1109_v0, 0.0  ;;  %v266_v2 = vsel %vm265_vm2, %v263_v63, 0.0  ;;  %446 = vmatpush2.msra.mxu0 %v368_v60  ;;  %v364_v0 = vld [vmem:[%s1683_s7 + $0x180] sm:$0xff] }
 0x192   :  { %447 = vmatprep.subr.mxu0 %v367_v61  ;;  %v553_v60 = vld [vmem:[%s1687_s11 + $0xe0] sm:$0xff]  ;;  %v552_v61 = vld [vmem:[%s1687_s11 + $0xd8] sm:$0xff] }
 0x193   :  { %v268_v3 = vsel %vm267_vm3, %v264_v1, 0.0  ;;  %448 = vmatpush2.msra.mxu0 %v366_v62  ;;  %v620_v62 = vld [vmem:[%s1687_s11 + $0x2f8] sm:$0xff] }
 0x194   :  { %v269_v4 = vadd.f32 %v268_v3, %v266_v2  ;;  %v362_v2 = vld [vmem:[%s1683_s7 + $0x170] sm:$0xff]  ;;  %v361_v3 = vld [vmem:[%s1683_s7 + $0x168] sm:$0xff] }
 0x196   :  { %270 = vadd.xlane.f32.xlu0 %v269_v4  ;;  %v360_v4 = vld [vmem:[%s1683_s7 + $0x160] sm:$0xff] }
 0x21f   :  { %v271_v44 = vpop.xlane.xlu0 %270 }
 0x220   :  { %v273_v47 = vmul.f32 0.003968254, %v271_v44 }
 0x222   :  { %v1237_v49 = vsub.f32 %v263_v63, %v273_v47  ;;  %v1241_v50 = vsub.f32 %v264_v1, %v273_v47  ;;  %v365_v63 = vld [vmem:[%s1683_s7 + $0x188] sm:$0xff]  ;;  %v363_v1 = vld [vmem:[%s1683_s7 + $0x178] sm:$0xff]  ;;  %v571_v47 = vld [vmem:[%s1687_s11 + $0x170] sm:$0xff] }
 0x223   :  { %449 = vmatprep.subr.mxu0 %v365_v63  ;;  %638 = vmatprep.subr.mxu1 %v571_v47  ;;  %v572_v63 = vld [vmem:[%s1687_s11 + $0x178] sm:$0xff] }
 0x224   :  { %v276_v51 = vmul.f32 %v1237_v49, %v1237_v49  ;;  %v277_v52 = vmul.f32 %v1241_v50, %v1241_v50  ;;  %450 = vmatpush2.msra.mxu0 %v364_v0  ;;  %v550_v0 = vld [vmem:[%s1687_s11 + $0xc8] sm:$0xff]  ;;  %v604_v47 = vld [vmem:[%s1687_s11 + $0x278] sm:$0xff] }
 0x225   :  { %451 = vmatprep.subr.mxu0 %v363_v1  ;;  %v617_v1 = vld [vmem:[%s1687_s11 + $0x2e0] sm:$0xff] }
 0x226   :  { %v278_v53 = vsel %vm265_vm2, %v276_v51, 0.0  ;;  %v279_v54 = vsel %vm267_vm3, %v277_v52, 0.0  ;;  %452 = vmatpush2.msra.mxu0 %v362_v2  ;;  %v567_v51 = vld [vmem:[%s1687_s11 + $0x150] sm:$0xff]  ;;  %v565_v52 = vld [vmem:[%s1687_s11 + $0x140] sm:$0xff] }
 0x227   :  { %v280_v55 = vadd.f32 %v279_v54, %v278_v53  ;;  %453 = vmatprep.subr.mxu0 %v361_v3  ;;  %v564_v53 = vld [vmem:[%s1687_s11 + $0x138] sm:$0xff]  ;;  %v562_v54 = vld [vmem:[%s1687_s11 + $0x128] sm:$0xff]  ;;  %v549_v2 = vld [vmem:[%s1687_s11 + $0xc0] sm:$0xff] }
 0x228   :  { %454 = vmatpush2.msra.mxu0 %v360_v4  ;;  %v569_v3 = vld [vmem:[%s1687_s11 + $0x160] sm:$0xff]  ;;  %v614_v4 = vld [vmem:[%s1687_s11 + $0x2c8] sm:$0xff] }
 0x229   :  { %281 = vadd.xlane.f32.xlu0 %v280_v55  ;;  %455 = vmatprep.subr.mxu0 %v359_v5  ;;  %v561_v55 = vld [vmem:[%s1687_s11 + $0x120] sm:$0xff]  ;;  %v547_v5 = vld [vmem:[%s1687_s11 + $0xb0] sm:$0xff] }
 0x22a   :  { %456 = vmatpush2.msra.mxu0 %v358_v6  ;;  %v566_v6 = vld [vmem:[%s1687_s11 + $0x148] sm:$0xff] }
 0x22b   :  { %457 = vmatprep.subr.mxu0 %v357_v7  ;;  %v546_v7 = vld [vmem:[%s1687_s11 + $0xa8] sm:$0xff] }
 0x22c   :  { %458 = vmatpush2.msra.mxu0 %v356_v8  ;;  %v611_v8 = vld [vmem:[%s1687_s11 + $0x2b0] sm:$0xff] }
 0x22d   :  { %459 = vmatprep.subr.mxu0 %v355_v9  ;;  %v544_v9 = vld [vmem:[%s1687_s11 + $0x98] sm:$0xff] }
 0x22e   :  { %460 = vmatpush2.msra.mxu0 %v354_v10  ;;  %v543_v10 = vld [vmem:[%s1687_s11 + $0x90] sm:$0xff] }
 0x22f   :  { %461 = vmatprep.subr.mxu0 %v353_v11  ;;  %v541_v11 = vld [vmem:[%s1687_s11 + $0x80] sm:$0xff] }
 0x230   :  { %462 = vmatpush2.msra.mxu0 %v352_v12  ;;  %v540_v12 = vld [vmem:[%s1687_s11 + $0x78] sm:$0xff] }
 0x231   :  { %463 = vmatprep.subr.mxu0 %v351_v13  ;;  %v538_v13 = vld [vmem:[%s1687_s11 + $0x68] sm:$0xff] }
 0x232   :  { %464 = vmatpush2.msra.mxu0 %v350_v14  ;;  %v537_v14 = vld [vmem:[%s1687_s11 + $0x60] sm:$0xff] }
 0x233   :  { %465 = vmatprep.subr.mxu0 %v349_v15  ;;  %v535_v15 = vld [vmem:[%s1687_s11 + $0x50] sm:$0xff] }
 0x234   :  { %466 = vmatpush2.msra.mxu0 %v348_v16  ;;  %v534_v16 = vld [vmem:[%s1687_s11 + $0x48] sm:$0xff] }
 0x235   :  { %834 = vmatprep.subr.mxu0 %v620_v62  ;;  %v594_v62 = vld [vmem:[%s1687_s11 + $0x228] sm:$0xff] }
 0x2b2   :  { %v282_v17 = vpop.xlane.xlu0 %281 }
 0x2b3   :  { %v283_v18 = vmul.f32 0.003968254, %v282_v17  ;;  %v532_v17 = vld [vmem:[%s1687_s11 + $0x38] sm:$0xff] }
 0x2b5   :  { %v284_v19 = vadd.f32 1e-05, %v283_v18  ;;  %v531_v18 = vld [vmem:[%s1687_s11 + $0x30] sm:$0xff] }
 0x2b7   :  { %871 = vrsqrt.f32 %v284_v19  ;;  %v529_v19 = vld [vmem:[%s1687_s11 + $0x20] sm:$0xff] }
 0x2c4   :  { %v872_v24 = vpop.eup %871 }
 0x2c5   :  { %v287_v25 = vmul.f32 %v872_v24, %v1241_v50  ;;  %v286_v27 = vmul.f32 %v872_v24, %v1237_v49  ;;  %v570_v49 = vld [vmem:[%s1687_s11 + $0x168] sm:$0xff]  ;;  %v568_v50 = vld [vmem:[%s1687_s11 + $0x158] sm:$0xff] }
 0x2c6   :  { %639 = vmatpush1.msra.mxu1 %v570_v49  ;;  %v618_v24 = vld [vmem:[%s1687_s11 + $0x2e8] sm:$0xff]  ;;  %v605_v49 = vld [vmem:[%s1687_s11 + $0x280] sm:$0xff] }
 0x2c7   :  { %v301_v29 = vmul.f32 %v297_v22, %v287_v25  ;;  %v300_v30 = vmul.f32 %v293_v23, %v286_v27  ;;  %640 = vmatprep.subr.mxu1 %v568_v50  ;;  %v525_v22 = vld [vmem:[%s1687_s11] sm:$0xff]  ;;  %v619_v23 = vld [vmem:[%s1687_s11 + $0x2f0] sm:$0xff]  ;;  %v616_v25 = vld [vmem:[%s1687_s11 + $0x2d8] sm:$0xff] }
 0x2c8   :  { %641 = vmatpush1.msra.mxu1 %v567_v51  ;;  %v613_v27 = vld [vmem:[%s1687_s11 + $0x2c0] sm:$0xff]  ;;  %v603_v50 = vld [vmem:[%s1687_s11 + $0x270] sm:$0xff] }
 0x2c9   :  { %v315_v31 = vadd.f32 %v311_v26, %v301_v29  ;;  %v314_v32 = vadd.f32 %v307_v28, %v300_v30  ;;  %642 = vmatprep.subr.mxu1 %v565_v52  ;;  %v615_v26 = vld [vmem:[%s1687_s11 + $0x2d0] sm:$0xff]  ;;  %v612_v28 = vld [vmem:[%s1687_s11 + $0x2b8] sm:$0xff]  ;;  %v610_v29 = vld [vmem:[%s1687_s11 + $0x2a8] sm:$0xff] }
 0x2ca   :  { %643 = vmatpush1.msra.mxu1 %v564_v53  ;;  %v557_v51 = vld [vmem:[%s1687_s11 + $0x100] sm:$0xff]  ;;  %v602_v53 = vld [vmem:[%s1687_s11 + $0x268] sm:$0xff] }
 0x2cb   :  { %830 = vmatprep.mubr.msk.f32.mxu0 %vm392_vm5, %v315_v31  ;;  %644 = vmatprep.subr.mxu1 %v562_v54  ;;  %v601_v52 = vld [vmem:[%s1687_s11 + $0x260] sm:$0xff]  ;;  %v600_v54 = vld [vmem:[%s1687_s11 + $0x258] sm:$0xff] }
 0x2cc   :  { %468 = vmatmul.mubr.f32.vlgmr.msra.gmra.mxu0 %v314_v32  ;;  %645 = vmatpush1.msra.mxu1 %v561_v55  ;;  %v554_v55 = vld [vmem:[%s1687_s11 + $0xe8] sm:$0xff] }
 0x2cd   :  { %646 = vmatprep.subr.mxu1 %v559_v56  ;;  %835 = vmatpush3.msra.mxu0 %v572_v63  ;;  %v598_v56 = vld [vmem:[%s1687_s11 + $0x248] sm:$0xff]  ;;  %v548_v63 = vld [vmem:[%s1687_s11 + $0xb8] sm:$0xff] }
 0x2ce   :  { %647 = vmatpush1.msra.mxu1 %v558_v57  ;;  %836 = vmatprep.subr.mxu0 %v617_v1  ;;  %v599_v57 = vld [vmem:[%s1687_s11 + $0x250] sm:$0xff]  ;;  %v593_v1 = vld [vmem:[%s1687_s11 + $0x220] sm:$0xff] }
 0x2cf   :  { %648 = vmatprep.subr.mxu1 %v556_v58  ;;  %837 = vmatpush3.msra.mxu0 %v569_v3  ;;  %v597_v58 = vld [vmem:[%s1687_s11 + $0x240] sm:$0xff] }
 0x2d0   :  { %649 = vmatpush1.msra.mxu1 %v555_v59  ;;  %838 = vmatprep.subr.mxu0 %v614_v4  ;;  %v551_v59 = vld [vmem:[%s1687_s11 + $0xd0] sm:$0xff]  ;;  %v545_v3 = vld [vmem:[%s1687_s11 + $0xa0] sm:$0xff] }
 0x2d1   :  { %650 = vmatprep.subr.mxu1 %v553_v60  ;;  %839 = vmatpush3.msra.mxu0 %v566_v6  ;;  %v595_v60 = vld [vmem:[%s1687_s11 + $0x230] sm:$0xff]  ;;  %v589_v4 = vld [vmem:[%s1687_s11 + $0x200] sm:$0xff]  ;;  %v588_v6 = vld [vmem:[%s1687_s11 + $0x1f8] sm:$0xff] }
 0x2d2   :  { %651 = vmatpush1.msra.mxu1 %v552_v61  ;;  %840 = vmatprep.subr.mxu0 %v611_v8  ;;  %v596_v61 = vld [vmem:[%s1687_s11 + $0x238] sm:$0xff]  ;;  %v586_v8 = vld [vmem:[%s1687_s11 + $0x1e8] sm:$0xff] }
 0x2d3   :  { %652 = vmatprep.subr.mxu1 %v550_v0  ;;  %v592_v0 = vld [vmem:[%s1687_s11 + $0x218] sm:$0xff] }
 0x2d4   :  { %653 = vmatpush1.msra.mxu1 %v549_v2  ;;  %v591_v2 = vld [vmem:[%s1687_s11 + $0x210] sm:$0xff] }
 0x2d5   :  { %654 = vmatprep.subr.mxu1 %v547_v5  ;;  %v590_v5 = vld [vmem:[%s1687_s11 + $0x208] sm:$0xff] }
 0x2d6   :  { %655 = vmatpush1.msra.mxu1 %v546_v7  ;;  %v542_v7 = vld [vmem:[%s1687_s11 + $0x88] sm:$0xff] }
 0x2d7   :  { %656 = vmatprep.subr.mxu1 %v544_v9  ;;  %v587_v9 = vld [vmem:[%s1687_s11 + $0x1f0] sm:$0xff] }
 0x2d8   :  { %657 = vmatpush1.msra.mxu1 %v543_v10  ;;  %v585_v10 = vld [vmem:[%s1687_s11 + $0x1e0] sm:$0xff] }
 0x2d9   :  { %658 = vmatprep.subr.mxu1 %v541_v11  ;;  %v539_v11 = vld [vmem:[%s1687_s11 + $0x70] sm:$0xff] }
 0x2da   :  { %659 = vmatpush1.msra.mxu1 %v540_v12  ;;  %v583_v12 = vld [vmem:[%s1687_s11 + $0x1d0] sm:$0xff] }
 0x2db   :  { %660 = vmatprep.subr.mxu1 %v538_v13  ;;  %v584_v13 = vld [vmem:[%s1687_s11 + $0x1d8] sm:$0xff] }
 0x2dc   :  { %661 = vmatpush1.msra.mxu1 %v537_v14  ;;  %v582_v14 = vld [vmem:[%s1687_s11 + $0x1c8] sm:$0xff] }
 0x2dd   :  { %662 = vmatprep.subr.mxu1 %v535_v15  ;;  %v536_v15 = vld [vmem:[%s1687_s11 + $0x58] sm:$0xff] }
 0x2de   :  { %663 = vmatpush1.msra.mxu1 %v534_v16  ;;  %v580_v16 = vld [vmem:[%s1687_s11 + $0x1b8] sm:$0xff] }
 0x2df   :  { %664 = vmatprep.subr.mxu1 %v532_v17  ;;  %v581_v17 = vld [vmem:[%s1687_s11 + $0x1c0] sm:$0xff] }
 0x2e0   :  { %665 = vmatpush1.msra.mxu1 %v531_v18  ;;  %v579_v18 = vld [vmem:[%s1687_s11 + $0x1b0] sm:$0xff] }
 0x2e1   :  { %666 = vmatprep.subr.mxu1 %v529_v19  ;;  %v533_v19 = vld [vmem:[%s1687_s11 + $0x40] sm:$0xff] }
 0x2e2   :  { %667 = vmatpush1.msra.mxu1 %v528_v20  ;;  %v577_v20 = vld [vmem:[%s1687_s11 + $0x1a0] sm:$0xff] }
 0x2e3   :  { %668 = vmatprep.subr.mxu1 %v526_v21  ;;  %v578_v21 = vld [vmem:[%s1687_s11 + $0x1a8] sm:$0xff] }
 0x2e4   :  { %669 = vmatpush1.msra.mxu1 %v525_v22  ;;  %v576_v22 = vld [vmem:[%s1687_s11 + $0x198] sm:$0xff] }
 0x2e5   :  { %670 = vmatprep.subr.mxu1 %v619_v23  ;;  %v530_v23 = vld [vmem:[%s1687_s11 + $0x28] sm:$0xff] }
 0x2e6   :  { %671 = vmatpush2.msra.mxu1 %v618_v24  ;;  %v574_v24 = vld [vmem:[%s1687_s11 + $0x188] sm:$0xff] }
 0x2e7   :  { %672 = vmatprep.subr.mxu1 %v616_v25  ;;  %v575_v25 = vld [vmem:[%s1687_s11 + $0x190] sm:$0xff] }
 0x2e8   :  { %673 = vmatpush2.msra.mxu1 %v615_v26  ;;  %v573_v26 = vld [vmem:[%s1687_s11 + $0x180] sm:$0xff] }
 0x2e9   :  { %674 = vmatprep.subr.mxu1 %v613_v27  ;;  %v527_v27 = vld [vmem:[%s1687_s11 + $0x10] sm:$0xff] }
 0x2ea   :  { %675 = vmatpush2.msra.mxu1 %v612_v28 }
 0x2eb   :  { %676 = vmatprep.subr.mxu1 %v610_v29 }
 0x38c   :  { %v469_v36 = vpop.f32.mrf.mxu0 }
 0x38d   :  { %v1341_v37 = vadd.f32 %v469_v36, %v385_v34 }
 0x38e   :  { %v471_v38 = vpop.f32.mrf.mxu0 }
 0x38f   :  { %v474_v39 = vmax.f32 %v1341_v37, 0.0  ;;  %v1344_v40 = vadd.f32 %v471_v38, %v389_v35  ;;  %v609_v37 = vld [vmem:[%s1687_s11 + $0x2a0] sm:$0xff] }
 0x390   :  { %677 = vmatpush2.msra.mxu1 %v609_v37 }
 0x391   :  { %v475_v41 = vmax.f32 %v1344_v40, 0.0  ;;  %v476_v42 = vsel %vm265_vm2, %v474_v39, 0.0  ;;  %v607_v40 = vld [vmem:[%s1687_s11 + $0x290] sm:$0xff] }
 0x392   :  { %678 = vmatprep.subr.mxu1 %v607_v40 }
 0x393   :  { %v477_v43 = vsel %vm265_vm2, %v475_v41, 0.0 }
 0x394   :  { %v478_v44 = vadd.f32 %v477_v43, %v476_v42  ;;  %v606_v43 = vld [vmem:[%s1687_s11 + $0x288] sm:$0xff] }
 0x395   :  { %679 = vmatpush2.msra.mxu1 %v606_v43 }
 0x396   :  { %479 = vadd.xlane.f32.xlu1 %v478_v44  ;;  %v560_v44 = vld [vmem:[%s1687_s11 + $0x118] sm:$0xff]  ;;  %680 = vmatprep.subr.mxu1 %v604_v47 }
 0x397   :  { %681 = vmatpush2.msra.mxu1 %v603_v50  ;;  %v633_v50 = vsub.s32 2, %v1088_v45 }
 0x398   :  { %682 = vmatprep.subr.mxu1 %v601_v52 }
 0x399   :  { %683 = vmatpush2.msra.mxu1 %v600_v54 }
 0x39a   :  { %684 = vmatprep.subr.mxu1 %v598_v56 }
 0x39b   :  { %685 = vmatpush2.msra.mxu1 %v597_v58 }
 0x39c   :  { %686 = vmatprep.subr.mxu1 %v595_v60 }
 0x39d   :  { %687 = vmatpush2.msra.mxu1 %v594_v62 }
 0x39e   :  { %688 = vmatprep.subr.mxu1 %v592_v0 }
 0x39f   :  { %689 = vmatpush2.msra.mxu1 %v591_v2 }
 0x3a0   :  { %690 = vmatprep.subr.mxu1 %v589_v4 }
 0x3a1   :  { %691 = vmatpush2.msra.mxu1 %v588_v6 }
 0x3a2   :  { %692 = vmatprep.subr.mxu1 %v586_v8 }
 0x3a3   :  { %693 = vmatpush2.msra.mxu1 %v585_v10 }
 0x3a4   :  { %694 = vmatprep.subr.mxu1 %v583_v12 }
 0x3a5   :  { %695 = vmatpush2.msra.mxu1 %v582_v14 }
 0x3a6   :  { %696 = vmatprep.subr.mxu1 %v580_v16 }
 0x3a7   :  { %697 = vmatpush2.msra.mxu1 %v579_v18 }
 0x3a8   :  { %698 = vmatprep.subr.mxu1 %v577_v20 }
 0x3a9   :  { %699 = vmatpush2.msra.mxu1 %v576_v22 }
 0x3aa   :  { %700 = vmatprep.subr.mxu1 %v574_v24 }
 0x3ab   :  { %701 = vmatpush2.msra.mxu1 %v573_v26 }
 0x41f   :  { %v480_v30 = vpop.xlane.xlu1 %479 }
 0x420   :  { %v482_v31 = vmul.f32 0.00390625, %v480_v30 }
 0x422   :  { %v1493_v32 = vsub.f32 %v474_v39, %v482_v31  ;;  %v1497_v33 = vsub.f32 %v475_v41, %v482_v31  ;;  %v563_v39 = vld [vmem:[%s1687_s11 + $0x130] sm:$0xff]  ;;  %v608_v41 = vld [vmem:[%s1687_s11 + $0x298] sm:$0xff]  ;;  %v497_v31 = vld [vmem:[%s1688_s9] sm:$0x3] }
 0x423   :  { %841 = vmatpush3.msra.mxu0 %v563_v39 }
 0x424   :  { %v485_v34 = vmul.f32 %v1493_v32, %v1493_v32  ;;  %v486_v35 = vmul.f32 %v1497_v33, %v1497_v33  ;;  %842 = vmatprep.subr.mxu0 %v608_v41 }
 0x425   :  { %843 = vmatpush3.msra.mxu0 %v560_v44 }
 0x426   :  { %v487_v36 = vsel %vm265_vm2, %v485_v34, 0.0  ;;  %v488_v38 = vsel %vm265_vm2, %v486_v35, 0.0  ;;  %844 = vmatprep.subr.mxu0 %v605_v49  ;;  %v511_v34 = vld [vmem:[%s1689_s10] sm:$0x3]  ;;  %v502_v35 = vrot.slane %v497_v31, %v1091_v46 }
 0x427   :  { %v489_v42 = vadd.f32 %v488_v38, %v487_v36  ;;  %845 = vmatpush3.msra.mxu0 %v557_v51  ;;  %v506_v36 = vrot.slane %v497_v31, %v1097_v48  ;;  %v516_v37 = vrot.slane %v511_v34, %v1091_v46  ;;  %v520_v39 = vrot.slane %v511_v34, %v1097_v48  ;;  %v621_v49 = vld [vmem:[%s1690_s12] sm:$0x7] }
 0x428   :  { %846 = vmatprep.subr.mxu0 %v602_v53  ;;  %v630_v51 = vrot.slane %v621_v49, %v1097_v48  ;;  %v634_v54 = vrot.slane %v621_v49, %v633_v50 }
 0x429   :  { %490 = vadd.xlane.f32.xlu1 %v489_v42  ;;  %847 = vmatpush3.msra.mxu0 %v554_v55 }
 0x42a   :  { %848 = vmatprep.subr.mxu0 %v599_v57 }
 0x42b   :  { %849 = vmatpush3.msra.mxu0 %v551_v59 }
 0x42c   :  { %850 = vmatprep.subr.mxu0 %v596_v61 }
 0x42d   :  { %851 = vmatpush3.msra.mxu0 %v548_v63 }
 0x42e   :  { %852 = vmatprep.subr.mxu0 %v593_v1 }
 0x42f   :  { %853 = vmatpush3.msra.mxu0 %v545_v3  ;;  %v888_v3 = vmov 1983009808  }
 0x430   :  { %854 = vmatprep.subr.mxu0 %v590_v5  ;;  %v802_v4 = vunpack.c.l.s4 %v888_v3 }
 0x431   :  { %855 = vmatpush3.msra.mxu0 %v542_v7 }
 0x432   :  { %856 = vmatprep.subr.mxu0 %v587_v9  ;;  %v803_v5 = vunpack.c.0.s8 %v802_v4 }
 0x433   :  { %857 = vmatpush3.msra.mxu0 %v539_v11 }
 0x434   :  { %858 = vmatprep.subr.mxu0 %v584_v13  ;;  %v806_v7 = vsub.s32 %v803_v5, %v1088_v45 }
 0x435   :  { %859 = vmatpush3.msra.mxu0 %v536_v15 }
 0x436   :  { %860 = vmatprep.subr.mxu0 %v581_v17 }
 0x437   :  { %861 = vmatpush3.msra.mxu0 %v533_v19 }
 0x438   :  { %862 = vmatprep.subr.mxu0 %v578_v21 }
 0x439   :  { %863 = vmatpush3.msra.mxu0 %v530_v23 }
 0x43a   :  { %864 = vmatprep.subr.mxu0 %v575_v25 }
 0x43b   :  { %865 = vmatpush3.msra.mxu0 %v527_v27 }
 0x4b2   :  { %v491_v28 = vpop.xlane.xlu1 %490 }
 0x4b3   :  { %v492_v29 = vmul.f32 0.00390625, %v491_v28 }
 0x4b5   :  { %v493_v30 = vadd.f32 1e-05, %v492_v29 }
 0x4b7   :  { %873 = vrsqrt.f32 %v493_v30 }
 0x4c4   :  { %v874_v38 = vpop.eup %873 }
 0x4c5   :  { %v496_v42 = vmul.f32 %v874_v38, %v1497_v33  ;;  %v495_v40 = vmul.f32 %v874_v38, %v1493_v32  ;;  %v626_v33 = vrot.slane %v621_v49, %v1091_v46 }
 0x4c7   :  { %v510_v41 = vmul.f32 %v506_v36, %v496_v42  ;;  %v509_v43 = vmul.f32 %v502_v35, %v495_v40 }
 0x4c9   :  { %v524_v44 = vadd.f32 %v520_v39, %v510_v41  ;;  %v523_v47 = vadd.f32 %v516_v37, %v509_v43 }
 0x4cb   :  { %702 = vmatprep.mubr.f32.mxu1 %v524_v44  ;;  %773 = vmatprep.mubr.f32.mxu0 %v524_v44 }
 0x4cc   :  { %703 = vmatmul.mubr.f32.vlgmr.msra.gmra.mxu1 %v523_v47  ;;  %774 = vmatmul.mubr.f32.vlgmr.msra.gmra.mxu0 %v523_v47 }
 0x58c   :  { %v704_v52 = vpop.f32.mrf.mxu1  ;;  %v866_v32 = vpop.f32.mrf.mxu0 }
 0x58d   :  { %v705_v53 = vadd.f32 %v704_v52, %v626_v33 }
 0x58e   :  { %v706_v55 = vpop.f32.mrf.mxu1  ;;  %v867_v56 = vpop.f32.mrf.mxu0 }
 0x58f   :  { %v831_v57 = vmul.f32 -1.442695, %v705_v53  ;;  %v707_v58 = vadd.f32 %v706_v55, %v630_v51  ;;  %v868_v59 = vadd.f32 %v867_v56, %v866_v32 }
 0x591   :  { %875 = vpow2.f32 %v831_v57  ;;  %v832_v60 = vmul.f32 -1.442695, %v707_v58  ;;  %v776_v61 = vadd.f32 %v868_v59, %v634_v54 }
 0x593   :  { %877 = vpow2.f32 %v832_v60  ;;  %v833_v62 = vmul.f32 -1.442695, %v776_v61 }
 0x595   :  { %879 = vpow2.f32 %v833_v62 }
 0x59e   :  { %v876_v46 = vpop.eup %875 }
 0x59f   :  { %v788_v63 = vadd.f32 1.0, %v876_v46 }
 0x5a0   :  { %v878_v0 = vpop.eup %877 }
 0x5a1   :  { %v789_v1 = vadd.f32 1.0, %v878_v0  ;;  %881 = vrcp.f32 %v788_v63 }
 0x5a2   :  { %v880_v48 = vpop.eup %879 }
 0x5a3   :  { %883 = vrcp.f32 %v789_v1  ;;  %v790_v2 = vadd.f32 1.0, %v880_v48 }
 0x5a5   :  { %885 = vrcp.f32 %v790_v2 }
 0x5ae   :  { %v882_v6 = vpop.eup %881 }
 0x5b0   :  { %v884_v8 = vpop.eup %883 }
 0x5b1   :  { %v800_v9 = vcombine.low %v882_v6, %v884_v8 }
 0x5b2   :  { %v886_v10 = vpop.eup %885 }
 0x5b3   :  { %v807_v11 = vrot.slane %v800_v9, %v806_v7  ;;  %v814_v12 = vrot.slane %v886_v10, %v806_v7 }
 0x5b5   :  { %v815_v13 = vcombine.low %v807_v11, %v814_v12 }
 0x5b7   :  { %821 = vst.msk [vmem:[%s1691_s13] sm:$0x3f] %vm820_vm9, %v815_v13 }

</bundles_post_ra>
